<compile_context>
chip_gen: v5e
topology: v5e:2x2
jax: 0.10.0
libtpu: 0.0.40
codegen_flags: <defaults>
</compile_context>

<pallas_src>
import jax
import jax.numpy as jnp
from jax.experimental import pallas as pl
from jax.experimental.pallas import tpu as pltpu

block_size = 32
n_embd = 64


def head_kernel(x_ref, wqkv_ref, bqkv_ref, o_ref):
    Bb, T, C = x_ref.shape
    H = o_ref.shape[-1]

    # --- fused QKV projection: one MXU pass, M = Bb*T rows, N = 3H cols ---
    x2d = x_ref[...].reshape(Bb * T, C)
    qkv = jnp.dot(x2d, wqkv_ref[...], preferred_element_type=jnp.float32)
    qkv = (qkv + bqkv_ref[...]).reshape(Bb, T, 3 * H)

    q = qkv[:, :, 0 * H:1 * H]                      # (Bb, T, H)
    k = qkv[:, :, 1 * H:2 * H]
    v = qkv[:, :, 2 * H:3 * H]

    # --- attention scores: contract over H directly (no explicit k.T relayout) ---
    wei = jnp.einsum("btd,bsd->bts", q, k,
                     preferred_element_type=jnp.float32) * (C ** 0.5)   # (Bb, T, T)

    # causal (lower-triangular) mask: tril[:T, :T] == 0 -> large finite negative
    row = jax.lax.broadcasted_iota(jnp.int32, (Bb, T, T), 1)
    col = jax.lax.broadcasted_iota(jnp.int32, (Bb, T, T), 2)
    wei = jnp.where(col <= row, wei, jnp.finfo(jnp.float32).min)

    # numerically stable softmax; reciprocal-multiply keeps the divide off the VALU
    wei = wei - jnp.max(wei, axis=-1, keepdims=True)
    wei = jnp.exp(wei)
    inv = pl.reciprocal(jnp.sum(wei, axis=-1, keepdims=True), approx=False)
    wei = wei * inv

    # TODO(synk): nn.Dropout(0.2) on `wei` is identity in eval mode; not applied.

    # --- out = wei @ v (batched) ---
    o_ref[...] = jnp.einsum("bts,bsd->btd", wei, v,
                            preferred_element_type=jnp.float32)


def head_forward(x, wq, bq, wk, bk, wv, bv, *, batch_block=None):
    """x: (B, T, C); wq/wk/wv: (C, H) (already W.T); bq/bk/bv: (1, H)."""
    B, T, C = x.shape
    H = wq.shape[1]

    # Fuse the three projections into one lane-denser (C, 3H) matmul.
    wqkv = jnp.concatenate([wq, wk, wv], axis=1)    # (C, 3H)
    bqkv = jnp.concatenate([bq, bk, bv], axis=1)    # (1, 3H)

    if batch_block is None:
        # Fold batch into the block (fills MXU rows, amortizes ~0.35us/step grid overhead),
        # but keep >=2 grid steps so the batch axis can shard across v7x's 2 TensorCores.
        batch_block = B // 2 if (B >= 2 and B % 2 == 0) else B
    assert B % batch_block == 0, "batch_block must divide B"
    grid = (B // batch_block,)

    return pl.pallas_call(
        head_kernel,
        out_shape=jax.ShapeDtypeStruct((B, T, H), jnp.float32),
        grid_spec=pltpu.PrefetchScalarGridSpec(
            num_scalar_prefetch=0,
            grid=grid,
            in_specs=[
                pl.BlockSpec((batch_block, T, C), lambda b: (b, 0, 0)),
                pl.BlockSpec((C, 3 * H), lambda b: (0, 0)),
                pl.BlockSpec((1, 3 * H), lambda b: (0, 0)),
            ],
            out_specs=pl.BlockSpec((batch_block, T, H), lambda b: (b, 0, 0)),
        ),
        compiler_params=pltpu.CompilerParams(
            dimension_semantics=("parallel",)),
    )(x, wqkv, bqkv)


if __name__ == "__main__":
    B, T, C = 8, 8, n_embd        # T <= block_size
    head_size = 16

    key = jax.random.PRNGKey(0)
    kx, kq, kbq, kk, kbk, kv, kbv = jax.random.split(key, 7)

    x = jax.random.normal(kx, (B, T, C), dtype=jnp.float32)

    # nn.Linear(n_embd, head_size): weight (H, C), bias (H,). We store W.T = (C, H).
    bound = 1.0 / (C ** 0.5)
    wq = jax.random.uniform(kq, (C, head_size), jnp.float32, -bound, bound)
    bq = jax.random.uniform(kbq, (1, head_size), jnp.float32, -bound, bound)
    wk = jax.random.uniform(kk, (C, head_size), jnp.float32, -bound, bound)
    bk = jax.random.uniform(kbk, (1, head_size), jnp.float32, -bound, bound)
    wv = jax.random.uniform(kv, (C, head_size), jnp.float32, -bound, bound)
    bv = jax.random.uniform(kbv, (1, head_size), jnp.float32, -bound, bound)

    out = head_forward(x, wq, bq, wk, bk, wv, bv)
    jax.block_until_ready(out)

    # pure-JAX reference check
    def ref(x):
        q = x @ wq + bq
        k = x @ wk + bk
        v = x @ wv + bv
        wei = jnp.einsum("btd,bsd->bts", q, k) * (C ** 0.5)
        mask = jnp.tril(jnp.ones((T, T), bool))
        wei = jnp.where(mask, wei, -jnp.inf)
        wei = jax.nn.softmax(wei, axis=-1)
        return wei @ v

    assert jnp.allclose(out, ref(x), atol=1e-4, rtol=1e-4)
    print("KERNEL_OK")
</pallas_src>

<mosaic_0001>
module attributes {stable_mosaic.version = 11 : i64} {
  func.func @head_kernel(%arg0: i32, %arg1: memref<4x8x64xf32, #tpu.memory_space<vmem>>, %arg2: memref<64x48xf32, #tpu.memory_space<vmem>>, %arg3: memref<1x48xf32, #tpu.memory_space<vmem>>, %arg4: memref<4x8x16xf32, #tpu.memory_space<vmem>>) attributes {dimension_semantics = [#tpu.dimension_semantics<parallel>], iteration_bounds = array<i64: 2>, scalar_prefetch = 0 : i64, scratch_operands = 0 : i64, tpu.core_type = #tpu.core_type<tc>, window_params = [{transform_indices = @transform_0, window_bounds = array<i64: 4, 8, 64>}, {pipeline_mode = #tpu.pipeline_mode<synchronous>, transform_indices = @transform_1, window_bounds = array<i64: 64, 48>}, {pipeline_mode = #tpu.pipeline_mode<synchronous>, transform_indices = @transform_2, window_bounds = array<i64: 1, 48>}, {transform_indices = @transform_3, window_bounds = array<i64: 4, 8, 16>}]} {
    %c0 = arith.constant 0 : index
    %c0_0 = arith.constant 0 : index
    %c0_1 = arith.constant 0 : index
    %0 = vector.load %arg1[%c0, %c0_0, %c0_1] : memref<4x8x64xf32, #tpu.memory_space<vmem>>, vector<4x8x64xf32>
    %1 = vector.shape_cast %0 : vector<4x8x64xf32> to vector<32x64xf32>
    %c0_2 = arith.constant 0 : index
    %c0_3 = arith.constant 0 : index
    %2 = vector.load %arg2[%c0_2, %c0_3] : memref<64x48xf32, #tpu.memory_space<vmem>>, vector<64x48xf32>
    %cst = arith.constant dense<0.000000e+00> : vector<32x48xf32>
    %3 = tpu.matmul %1, %2, %cst {dimension_numbers = #tpu.dot_dimension_numbers<[1], [0], [0], [1], [0, 0, 1, 1], [], []>} : vector<32x64xf32>, vector<64x48xf32>, vector<32x48xf32> -> vector<32x48xf32>
    %c0_4 = arith.constant 0 : index
    %c0_5 = arith.constant 0 : index
    %4 = vector.load %arg3[%c0_4, %c0_5] : memref<1x48xf32, #tpu.memory_space<vmem>>, vector<1x48xf32>
    %5 = vector.broadcast %4 : vector<1x48xf32> to vector<32x48xf32>
    %6 = arith.addf %3, %5 : vector<32x48xf32>
    %7 = vector.shape_cast %6 : vector<32x48xf32> to vector<4x8x48xf32>
    %8 = vector.extract_strided_slice %7 {offsets = [0, 0, 0], sizes = [4, 8, 16], strides = [1, 1, 1]} : vector<4x8x48xf32> to vector<4x8x16xf32>
    %9 = vector.extract_strided_slice %7 {offsets = [0, 0, 16], sizes = [4, 8, 16], strides = [1, 1, 1]} : vector<4x8x48xf32> to vector<4x8x16xf32>
    %10 = vector.extract_strided_slice %7 {offsets = [0, 0, 32], sizes = [4, 8, 16], strides = [1, 1, 1]} : vector<4x8x48xf32> to vector<4x8x16xf32>
    "tpu.trace_start"() <{level = 10 : i32, message = "btd,bsd->bts"}> : () -> ()
    %cst_6 = arith.constant dense<0.000000e+00> : vector<4x8x8xf32>
    %11 = tpu.matmul %8, %9, %cst_6 {dimension_numbers = #tpu.dot_dimension_numbers<[2], [2], [1], [1], [0, 0, 0, 1, 1, 1], [0], [0]>} : vector<4x8x16xf32>, vector<4x8x16xf32>, vector<4x8x8xf32> -> vector<4x8x8xf32>
    "tpu.trace_stop"() : () -> ()
    %cst_7 = arith.constant 8.000000e+00 : f32
    %12 = vector.broadcast %cst_7 : f32 to vector<4x8x8xf32>
    %13 = arith.mulf %11, %12 : vector<4x8x8xf32>
    %14 = tpu.iota {dimensions = array<i32: 1>} : vector<4x8x8xi32>
    %15 = tpu.iota {dimensions = array<i32: 2>} : vector<4x8x8xi32>
    %16 = arith.cmpi sle, %15, %14 : vector<4x8x8xi32>
    %cst_8 = arith.constant -3.40282347E+38 : f32
    %17 = vector.broadcast %cst_8 : f32 to vector<4x8x8xf32>
    %18 = arith.select %16, %13, %17 : vector<4x8x8xi1>, vector<4x8x8xf32>
    %cst_9 = arith.constant dense<0xFF800000> : vector<4x8xf32>
    %19 = vector.multi_reduction <maximumf>, %18, %cst_9 [2] : vector<4x8x8xf32> to vector<4x8xf32>
    %20 = vector.shape_cast %19 : vector<4x8xf32> to vector<4x8x1xf32>
    %21 = vector.broadcast %20 : vector<4x8x1xf32> to vector<4x8x8xf32>
    %22 = arith.subf %18, %21 : vector<4x8x8xf32>
    %23 = math.exp %22 : vector<4x8x8xf32>
    %cst_10 = arith.constant dense<0.000000e+00> : vector<4x8xf32>
    %24 = vector.multi_reduction <add>, %23, %cst_10 [2] : vector<4x8x8xf32> to vector<4x8xf32>
    %25 = vector.shape_cast %24 : vector<4x8xf32> to vector<4x8x1xf32>
    %26 = tpu.reciprocal %25 : vector<4x8x1xf32> -> vector<4x8x1xf32>
    %27 = vector.broadcast %26 : vector<4x8x1xf32> to vector<4x8x8xf32>
    %28 = arith.mulf %23, %27 : vector<4x8x8xf32>
    "tpu.trace_start"() <{level = 10 : i32, message = "bts,bsd->btd"}> : () -> ()
    %cst_11 = arith.constant dense<0.000000e+00> : vector<4x8x16xf32>
    %29 = tpu.matmul %28, %10, %cst_11 {dimension_numbers = #tpu.dot_dimension_numbers<[2], [1], [1], [2], [0, 0, 0, 1, 1, 2], [0], [0]>} : vector<4x8x8xf32>, vector<4x8x16xf32>, vector<4x8x16xf32> -> vector<4x8x16xf32>
    "tpu.trace_stop"() : () -> ()
    %c0_12 = arith.constant 0 : index
    %c0_13 = arith.constant 0 : index
    %c0_14 = arith.constant 0 : index
    %30 = vector.load %arg4[%c0_12, %c0_13, %c0_14] : memref<4x8x16xf32, #tpu.memory_space<vmem>>, vector<4x8x16xf32>
    tpu.vector_store %arg4[%c0_12, %c0_13, %c0_14], %29 {strides = array<i32>} : memref<4x8x16xf32, #tpu.memory_space<vmem>>, vector<4x8x16xf32>,
    return
  }
  func.func @transform_0(%arg0: i32) -> (i32, i32, i32) {
    %c0_i32 = arith.constant 0 : i32
    %c0_i32_0 = arith.constant 0 : i32
    %c0_i32_1 = arith.constant 0 : i32
    return %arg0, %c0_i32, %c0_i32_0 : i32, i32, i32
  }
  func.func @transform_1(%arg0: i32) -> (i32, i32) {
    %c0_i32 = arith.constant 0 : i32
    %c0_i32_0 = arith.constant 0 : i32
    %c0_i32_1 = arith.constant 0 : i32
    return %c0_i32, %c0_i32_0 : i32, i32
  }
  func.func @transform_2(%arg0: i32) -> (i32, i32) {
    %c0_i32 = arith.constant 0 : i32
    %c0_i32_0 = arith.constant 0 : i32
    %c0_i32_1 = arith.constant 0 : i32
    return %c0_i32, %c0_i32_0 : i32, i32
  }
  func.func @transform_3(%arg0: i32) -> (i32, i32, i32) {
    %c0_i32 = arith.constant 0 : i32
    %c0_i32_0 = arith.constant 0 : i32
    %c0_i32_1 = arith.constant 0 : i32
    return %arg0, %c0_i32, %c0_i32_0 : i32, i32, i32
  }
}

</mosaic_0001>

<bundles_post_ra>
// kernel: tpu_custom_call.1
= control target key start
LH: loop header
LB: loop body
LE: loop exit
PB: predicated region body
PF: predicated region fallthrough
CT: control target
= control target key end

     0   :  { %8 = vsyncpa [#allocation3], 0  ;;  %s999_s0 = inlined_call_operand.vmem [shape: f32[8,8,64], index: 0, kind: input, shape index: {}]   ;;  %s1000_s1 = inlined_call_operand.vmem [shape: f32[64,48], index: 1, kind: input, shape index: {}]   ;;  %s1001_s2 = inlined_call_operand.vmem [shape: f32[1,48], index: 2, kind: input, shape index: {}]   ;;  %s1002_s3 = inlined_call_operand.hbm [shape: f32[8,8,16], index: 3, kind: output, shape index: {}]  }
   0x1   :  { %10 = vsyncpa [#allocation3 + $0x1], 0  ;;  %s825_s12 = smov 0   ;;  %s827_s13 = smov 0  }
   0x2   :  { %s829_s14 = smov 0   ;;  %s831_s15 = smov 0  }
   0x3 LB: > { %s846_s16 = sadd.s32 4294967295, %s799_s15   ;;  %s635_s17 = sadd.s32 4294967294, %s799_s15   ;;  %s799_s15 = sphi %s831_s15, %s1010_s15   ;;  %s795_s14 = sphi %s829_s14, %s1009_s14   ;;  %s791_s13 = sphi %s827_s13, %s1008_s13   ;;  %s787_s12 = sphi %s825_s12, %s1007_s12  }
   0x4   : > { %s850_s18 = sadd.s32 1, %s799_s15   ;;  %s91_s19 = sadd.s32 1, %s795_s14 }
   0x5   : > { %s88_s20 = ssub.s32 %s799_s15, %s850_s18  ;;  %p101_p0 = scmp.ne.s32.totalorder %s795_s14, %s791_s13 }
   0x6   : > { %p89_p1 = scmp.eq.s32.totalorder %s88_s20, 0  ;;  %p102_p2 = scmp.eq.s32.totalorder %s846_s16, 1 }
   0x7   : > { %p107_p3 = scmp.ne.s32.totalorder %s791_s13, %s787_s12  ;;  %p108_p4 = scmp.eq.s32.totalorder %s635_s17, 1 }
   0x8   : > { %s861_s21 = scalar_select %p89_p1, %s795_s14, %s91_s19  }
   0x9   : > { %p863_p5 = por %p102_p2, %p101_p0  ;;  %p867_p6 = por %p108_p4, %p107_p3 }
   0xa   : > { %p638_p7 = scmp.ge.s32.totalorder %s799_s15, 1  ;;  %p141_p8 = scmp.lt.s32.totalorder %s799_s15, 3 }
   0xc   : > { %p142_p9 = pnand %p638_p7, %p141_p8 }
   0xd   : > { %s640_s28 = sshll.u32 (!%p142_p9), %s846_s16, 2  ;;  %s801_s29 = smov (!%p142_p9), 112  }
   0xe   : > { %145 = sbr.rel (%p142_p9) target bundleno = 848 (0x350), region = 32  ;;  %p166_p10 = scmp.lt.s32.totalorder (!%p142_p9), %s640_s28, 7 }
   0xf   : > { %s802_s30 = smov (!%p142_p9), 96   ;;  %s162_s4 = sand.u32 (!%p142_p9), 1, %s791_s13  }
  0x10   : > { %s639_s5 = sshll.u32 (!%p142_p9), %s162_s4, 5  ;;  %s663_s6 = sshll.u32 (!%p142_p9), %s846_s16, 5 }
  0x11   : > { %s164_s7 = scalar_lea.vmem (!%p142_p9), [#allocation2], %s639_s5  ;;  %s569_s10 = scalar_lea.hbm (!%p142_p9), %s1002_s3, %s663_s6 }
  0x12   : > { %s570_s11 = sshll.u32 (!%p142_p9), %s164_s7, 4  ;;  %s572_s17 = sshll.u32 (!%p142_p9), %s569_s10, 4  ;;  %s571_s11 = int_to_ptr.vmem [resolvable:$true] %s570_s11  ;;  %s573_s17 = int_to_ptr.hbm [resolvable:$true] %s572_s17 }
  0x13   : > { %v183_v0 = vld [vmem:[%s1000_s1 + $0x38] sm:$0xff]  ;;  %v182_v1 = vld [vmem:[%s1000_s1 + $0x30] sm:$0xff]  ;;  %v181_v2 = vld [vmem:[%s1000_s1 + $0x28] sm:$0xff]  ;;  %s1012_s28 = smov (!%p166_p10, %s640_s28), 7  ;;  %vm188_vm0 = vcmask 523264   ;;  %vm233_vm1 = vcmask 130048   ;;  %v343_v25 = vlaneseq }
  0x14   : > { %209 = vmatpush.msra.mxu0 %v183_v0  ;;  %664 = vmatpush.msra.mxu3 %v183_v0  ;;  %v180_v3 = vld [vmem:[%s1000_s1 + $0x20] sm:$0xff]  ;;  %v179_v4 = vld [vmem:[%s1000_s1 + $0x18] sm:$0xff]  ;;  %s641_s8 = sshll.u32 %s1012_s28, 3  ;;  %v178_v5 = vld [vmem:[%s1000_s1 + $0x10] sm:$0xff]  ;;  %vm352_vm3 = vcmask 64512   ;;  %s558_s16 = scalar_lea.sflag [#allocation3], %s162_s4 }
  0x15   : > { %v177_v6 = vld [vmem:[%s1000_s1 + $0x8] sm:$0xff]  ;;  %s169_s24 = scalar_lea.vmem %s999_s0, %s641_s8  ;;  %v176_v7 = vld [vmem:[%s1000_s1] sm:$0xff]  ;;  %v344_v26 = vshrl.u32 %v343_v25, 7  ;;  %v346_v27 = vand.u32 127, %v343_v25  ;;  %s751_s19 = sshra.s32 %s573_s17, 4  ;;  %s752_s19 = int_to_ptr.hbm [resolvable:$true] %s751_s19 }
  0x16   : > { %210 = vmatpush.msra.mxu0 %v182_v1  ;;  %665 = vmatpush.msra.mxu3 %v182_v1  ;;  %v172_v8 = vld [vmem:[%s169_s24] sm:$0xff]  ;;  %v175_v9 = vld [vmem:[%s169_s24 + $0x18] sm:$0xff]  ;;  %v173_v10 = vld [vmem:[%s169_s24 + $0x8] sm:$0xff]  ;;  %s753_s20 = scalar_lea.hbm %s752_s19, 32  ;;  %s757_s26 = scalar_lea.hbm %s1002_s3, 64 }
  0x17   : > { %v174_v11 = vld [vmem:[%s169_s24 + $0x10] sm:$0xff]  ;;  %v720_v12 = vld [vmem:[%s1001_s2] ss:$0 sm:$0xff]  ;;  %vm347_vm2 = vcmp.le.s32.totalorder %v346_v27, %v344_v26  ;;  %p754_p11 = scmp.ne.s32.totalorder %s752_s19, %s753_s20  ;;  %p758_p0 = scmp.lt.s32.totalorder %s752_s19, %s1002_s3 }
  0x18   : > { %211 = vmatpush.msra.mxu0 %v181_v2  ;;  %666 = vmatpush.msra.mxu3 %v181_v2  ;;  %p759_p1 = scmp.lt.s32.totalorder %s757_s26, %s753_s20 }
  0x19   : > { %p755_p12 = pnand %p754_p11, %p863_p5 }
  0x1a   : > { %212 = vmatpush.msra.mxu0 %v180_v3  ;;  %667 = vmatpush.msra.mxu3 %v180_v3  ;;  %p760_p2 = por %p759_p1, %p758_p0 }
  0x1b   : > { %p756_p13 = pneg %p755_p12 }
  0x1c   : > { %213 = vmatpush.msra.mxu0 %v179_v4  ;;  %668 = vmatpush.msra.mxu3 %v179_v4 }
  0x1d   : > { %p761_p3 = pnand %p760_p2, %p756_p13 }
  0x1e   : > { %214 = vmatpush.msra.mxu0 %v178_v5  ;;  %669 = vmatpush.msra.mxu3 %v178_v5 }
  0x20   : > { %215 = vmatpush.msra.mxu0 %v177_v6  ;;  %670 = vmatpush.msra.mxu3 %v177_v6 }
  0x22   : > { %216 = vmatpush.msra.mxu0 %v176_v7  ;;  %671 = vmatpush.msra.mxu3 %v176_v7 }
  0x23   : > { %642 = vmatmul.msk.f32.vlgmr.msra.gmra.mxu0 %vm188_vm0, %v172_v8  ;;  %645 = vmatmul.msk.f32.vlgmr.msra.gmra.mxu3 %vm188_vm0, %v175_v9 }
  0x2b   : > { %643 = vmatmul.msk.f32.gmra.mxu0 %vm188_vm0, %v173_v10 }
  0x33   : > { %644 = vmatmul.msk.f32.gmra.mxu0 %vm188_vm0, %v174_v11 }
  0xa0   : > { %v218_v13 = vpop.f32.mrf.mxu0 }
  0xa1   : > { %v904_v14 = vadd.f32 %v720_v12, %v218_v13 }
  0xa3   : > { %231 = vrot.lane.b32.xlu0 %v904_v14, %s801_s29 }
  0xa6   : > { %v227_v19 = vpop.f32.mrf.mxu3 }
  0xa7   : > { %v228_v20 = vadd.f32 %v720_v12, %v227_v19 }
  0xa8   : > { %v221_v15 = vpop.f32.mrf.mxu0 }
  0xa9   : > { %v222_v16 = vadd.f32 %v720_v12, %v221_v15 }
  0xab   : > { %259 = vrot.lane.b32.xlu0 %v222_v16, %s801_s29  ;;  %v715_v44 = vpack.i.bf16 %v228_v20, %v222_v16 }
  0xb0   : > { %v224_v17 = vpop.f32.mrf.mxu0 }
  0xb1   : > { %v225_v18 = vadd.f32 %v720_v12, %v224_v17 }
  0xb3   : > { %286 = vrot.lane.b32.xlu1 %v225_v18, %s801_s29 }
  0xbb   : > { %313 = vrot.lane.b32.xlu1 %v228_v20, %s801_s29 }
 0x115   : > { %v232_v21 = vpop.permute.xlu0 %231 }
 0x116   : > { %646 = vmatpush.xpose.msk.msra.mxu1 %vm233_vm1, %v232_v21 }
 0x119   : > { %647 = vmatmul.msk.f32.vlgmr.msra.gmra.mxu1 %vm233_vm1, %v904_v14 }
 0x11d   : > { %v260_v22 = vpop.permute.xlu0 %259 }
 0x11e   : > { %648 = vmatpush.xpose.msk.msra.mxu2 %vm233_vm1, %v260_v22 }
 0x121   : > { %649 = vmatmul.msk.f32.vlgmr.msra.gmra.mxu2 %vm233_vm1, %v222_v16 }
 0x125   : > { %v287_v23 = vpop.permute.xlu1 %286 }
 0x126   : > { %650 = vmatpush.xpose.msk.msrb.mxu3 %vm233_vm1, %v287_v23 }
 0x129   : > { %651 = vmatmul.msk.f32.vlgmr.msrb.gmra.mxu3 %vm233_vm1, %v225_v18 }
 0x12d   : > { %v314_v24 = vpop.permute.xlu1 %313 }
 0x12e   : > { %652 = vmatpush.xpose.msk.msrb.mxu1 %vm233_vm1, %v314_v24 }
 0x131   : > { %653 = vmatmul.msk.f32.vlgmr.msrb.gmra.mxu1 %vm233_vm1, %v228_v20 }
 0x196   : > { %v255_v28 = vpop.f32.mrf.mxu1 }
 0x197   : > { %v339_v29 = vmul.f32 8.0, %v255_v28 }
 0x199   : > { %v348_v30 = vsel %vm347_vm2, %v339_v29, -3.4028235e+38 }
 0x19a   : > { %v353_v31 = vsel %vm352_vm3, %v348_v30, -inf }
 0x19b   : > { %354 = vmax.xlane.f32.xlu2 %v353_v31 }
 0x1a4   : > { %v282_v32 = vpop.f32.mrf.mxu2 }
 0x1a5   : > { %v340_v33 = vmul.f32 8.0, %v282_v32 }
 0x1a7   : > { %v349_v34 = vsel %vm347_vm2, %v340_v33, -3.4028235e+38 }
 0x1a8   : > { %v356_v35 = vsel %vm352_vm3, %v349_v34, -inf }
 0x1a9   : > { %357 = vmax.xlane.f32.xlu2 %v356_v35 }
 0x1ac   : > { %v309_v36 = vpop.f32.mrf.mxu3 }
 0x1ad   : > { %v341_v37 = vmul.f32 8.0, %v309_v36 }
 0x1ae   : > { %v336_v38 = vpop.f32.mrf.mxu1 }
 0x1af   : > { %v342_v39 = vmul.f32 8.0, %v336_v38  ;;  %v350_v40 = vsel %vm347_vm2, %v341_v37, -3.4028235e+38 }
 0x1b0   : > { %v359_v41 = vsel %vm352_vm3, %v350_v40, -inf }
 0x1b1   : > { %360 = vmax.xlane.f32.xlu1 %v359_v41  ;;  %v351_v42 = vsel %vm347_vm2, %v342_v39, -3.4028235e+38 }
 0x1b2   : > { %v362_v43 = vsel %vm352_vm3, %v351_v42, -inf }
 0x1b3   : > { %363 = vmax.xlane.f32.xlu0 %v362_v43 }
 0x1c7   : > { %716 = vrot.lane.b32.xlu0 %v715_v44, %s802_s30 }
 0x1ca   : > { %501 = vrot.lane.b32.xlu1 %v225_v18, %s802_s30 }
 0x20e   : > { %v355_v45 = vpop.xlane.xlu2 %354 }
 0x20f   : > { %v365_v46 = vsub.f32 %v348_v30, %v355_v45 }
 0x211   : > { %v369_v47 = vmul.f32 1.442695, %v365_v46 }
 0x213   : > { %721 = vpow2.f32 %v369_v47 }
 0x219   : > { %v926_v48 = vpop.eup %721 }
 0x21a   : > { %v377_v49 = vsel %vm352_vm3, %v926_v48, 0.0 }
 0x21b   : > { %378 = vadd.xlane.f32.xlu2 %v377_v49 }
 0x21c   : > { %v358_v50 = vpop.xlane.xlu2 %357 }
 0x21d   : > { %v366_v53 = vsub.f32 %v349_v34, %v358_v50 }
 0x21f   : > { %v371_v55 = vmul.f32 1.442695, %v366_v53 }
 0x224   : > { %v361_v56 = vpop.xlane.xlu1 %360 }
 0x225   : > { %v367_v58 = vsub.f32 %v350_v40, %v361_v56 }
 0x226   : > { %v364_v51 = vpop.xlane.xlu0 %363 }
 0x227   : > { %v368_v52 = vsub.f32 %v351_v42, %v364_v51  ;;  %v373_v60 = vmul.f32 1.442695, %v367_v58 }
 0x229   : > { %v375_v54 = vmul.f32 1.442695, %v368_v52 }
 0x22b   : > { %723 = vpow2.f32 %v375_v54 }
 0x22c   : > { %725 = vpow2.f32 %v371_v55 }
 0x22d   : > { %727 = vpow2.f32 %v373_v60 }
 0x231   : > { %v930_v57 = vpop.eup %723 }
 0x232   : > { %v386_v59 = vsel %vm352_vm3, %v930_v57, 0.0  ;;  %v934_v61 = vpop.eup %725 }
 0x233   : > { %387 = vadd.xlane.f32.xlu2 %v386_v59  ;;  %v380_v0 = vsel %vm352_vm3, %v934_v61, 0.0  ;;  %v941_v2 = vpop.eup %727 }
 0x234   : > { %v383_v3 = vsel %vm352_vm3, %v941_v2, 0.0 }
 0x239   : > { %v936_v62 = vpop.permute.xlu0 %716 }
 0x23a   : > { %v718_v63 = vunpack.i.l.bf16 %v936_v62  ;;  %v719_v38 = vunpack.i.h.bf16 %v936_v62 }
 0x23b   : > { %381 = vadd.xlane.f32.xlu2 %v380_v0 }
 0x23c   : > { %v502_v1 = vpop.permute.xlu1 %501  ;;  %496 = vmatpush.msra.mxu3 %v718_v63 }
 0x23d   : > { %522 = vmatpush.msra.mxu1 %v502_v1 }
 0x243   : > { %384 = vadd.xlane.f32.xlu2 %v383_v3 }
 0x25b   : > { %449 = vrot.lane.b32.xlu2 %v904_v14, %s802_s30 }
 0x28e   : > { %v379_v4 = vpop.xlane.xlu2 %378 }
 0x28f   : > { %729 = vrcp.f32 %v379_v4  ;;  %v400_v15 = vand.u32 2147483648, %v379_v4  ;;  %vm394_vm5 = vweird.f32 %v379_v4  ;;  %v398_v18 = vand.u32 2147483647, %v379_v4 }
 0x291   : > { %v401_v21 = vor.u32 1.1754944e-38, %v400_v15  ;;  %vm399_vm7 = vcmp.eq.f32.partialorder %v398_v18, 8.507059e+37 }
 0x295   : > { %v730_v5 = vpop.eup %729 }
 0x296   : > { %v390_v7 = vmul.f32 %v730_v5, %v379_v4  ;;  %vm395_vm4 = vweird.f32 %v730_v5 }
 0x297   : > { %vm396_vm6 = vmor %vm394_vm5, %vm395_vm4 }
 0x298   : > { %v391_v8 = vsub.f32 1.0, %v390_v7 }
 0x29a   : > { %v392_v11 = vmul.f32 %v730_v5, %v391_v8 }
 0x29c   : > { %v393_v13 = vadd.f32 %v730_v5, %v392_v11 }
 0x29e   : > { %v397_v20 = vsel %vm396_vm6, %v730_v5, %v393_v13 }
 0x29f   : > { %v402_v27 = vsel %vm399_vm7, %v401_v21, %v397_v20 }
 0x2a0   : > { %v445_v33 = vmul.f32 %v926_v48, %v402_v27 }
 0x2a6   : > { %v388_v6 = vpop.xlane.xlu2 %387 }
 0x2a7   : > { %731 = vrcp.f32 %v388_v6  ;;  %vm436_vm11 = vweird.f32 %v388_v6  ;;  %v442_v31 = vand.u32 2147483648, %v388_v6  ;;  %v440_v34 = vand.u32 2147483647, %v388_v6 }
 0x2a9   : > { %v443_v44 = vor.u32 1.1754944e-38, %v442_v31  ;;  %vm441_vm15 = vcmp.eq.f32.partialorder %v440_v34, 8.507059e+37 }
 0x2ad   : > { %v732_v9 = vpop.eup %731 }
 0x2ae   : > { %v382_v10 = vpop.xlane.xlu2 %381  ;;  %v432_v12 = vmul.f32 %v732_v9, %v388_v6  ;;  %vm437_vm9 = vweird.f32 %v732_v9 }
 0x2af   : > { %733 = vrcp.f32 %v382_v10  ;;  %v414_v24 = vand.u32 2147483648, %v382_v10  ;;  %v412_v26 = vand.u32 2147483647, %v382_v10  ;;  %vm408_vm10 = vweird.f32 %v382_v10  ;;  %vm950_vm14 = vmor %vm436_vm11, %vm437_vm9 }
 0x2b0   : > { %v433_v16 = vsub.f32 1.0, %v432_v12 }
 0x2b1   : > { %v415_v32 = vor.u32 1.1754944e-38, %v414_v24  ;;  %vm413_vm13 = vcmp.eq.f32.partialorder %v412_v26, 8.507059e+37 }
 0x2b2   : > { %v434_v22 = vmul.f32 %v732_v9, %v433_v16 }
 0x2b4   : > { %v435_v28 = vadd.f32 %v732_v9, %v434_v22 }
 0x2b5   : > { %v734_v17 = vpop.eup %733 }
 0x2b6   : > { %v404_v14 = vmul.f32 %v734_v17, %v382_v10  ;;  %v385_v19 = vpop.xlane.xlu2 %384  ;;  %vm409_vm8 = vweird.f32 %v734_v17  ;;  %v439_v41 = vsel %vm950_vm14, %v732_v9, %v435_v28 }
 0x2b7   : > { %735 = vrcp.f32 %v385_v19  ;;  %vm410_vm12 = vmor %vm408_vm10, %vm409_vm8  ;;  %v428_v45 = vand.u32 2147483648, %v385_v19  ;;  %v426_v47 = vand.u32 2147483647, %v385_v19  ;;  %v444_v48 = vsel %vm441_vm15, %v443_v44, %v439_v41 }
 0x2b8   : > { %v405_v23 = vsub.f32 1.0, %v404_v14  ;;  %vm422_vm2 = vweird.f32 %v385_v19  ;;  %v448_v52 = vmul.f32 %v930_v57, %v444_v48 }
 0x2b9   : > { %v429_v50 = vor.u32 1.1754944e-38, %v428_v45  ;;  %vm427_vm5 = vcmp.eq.f32.partialorder %v426_v47, 8.507059e+37 }
 0x2ba   : > { %v406_v25 = vmul.f32 %v734_v17, %v405_v23 }
 0x2bc   : > { %v407_v29 = vadd.f32 %v734_v17, %v406_v25 }
 0x2bd   : > { %v736_v30 = vpop.eup %735 }
 0x2be   : > { %v411_v35 = vsel %vm410_vm12, %v734_v17, %v407_v29  ;;  %v418_v36 = vmul.f32 %v736_v30, %v385_v19  ;;  %v450_v37 = vpop.permute.xlu2 %449  ;;  %vm423_vm0 = vweird.f32 %v736_v30 }
 0x2bf   : > { %v416_v40 = vsel %vm413_vm13, %v415_v32, %v411_v35  ;;  %470 = vmatpush.msrb.mxu2 %v450_v37  ;;  %vm424_vm4 = vmor %vm422_vm2, %vm423_vm0 }
 0x2c0   : > { %v419_v42 = vsub.f32 1.0, %v418_v36  ;;  %654 = vmatmul.msk.f32.vlgmr.msrb.gmra.mxu2 %vm352_vm3, %v445_v33  ;;  %v446_v43 = vmul.f32 %v934_v61, %v416_v40 }
 0x2c1   : > { %548 = vmatpush.msra.mxu2 %v719_v38 }
 0x2c2   : > { %v420_v46 = vmul.f32 %v736_v30, %v419_v42  ;;  %655 = vmatmul.msk.f32.vlgmr.msra.gmra.mxu3 %vm352_vm3, %v446_v43 }
 0x2c4   : > { %v421_v49 = vadd.f32 %v736_v30, %v420_v46 }
 0x2c6   : > { %v425_v51 = vsel %vm424_vm4, %v736_v30, %v421_v49 }
 0x2c7   : > { %v430_v53 = vsel %vm427_vm5, %v429_v50, %v425_v51 }
 0x2c8   : > { %657 = vmatmul.msk.f32.vlgmr.msra.gmra.mxu2 %vm352_vm3, %v448_v52  ;;  %v447_v54 = vmul.f32 %v941_v2, %v430_v53 }
 0x2ca   : > { %656 = vmatmul.msk.f32.vlgmr.msra.gmra.mxu1 %vm352_vm3, %v447_v54 }
 0x343   : > { %v472_v55 = vpop.f32.mrf.mxu2 }
 0x344   : > { %553 = vst.msk [vmem:[%s164_s7] sm:$0xff] %vm233_vm1, %v472_v55 }
 0x345   : > { %v498_v56 = vpop.f32.mrf.mxu3 }
 0x346   : > { %554 = vst.msk [vmem:[%s164_s7 + $0x8] sm:$0xff] %vm233_vm1, %v498_v56 }
 0x347   : > { %v524_v57 = vpop.f32.mrf.mxu1 }
 0x348   : > { %555 = vst.msk [vmem:[%s164_s7 + $0x10] sm:$0xff] %vm233_vm1, %v524_v57 }
 0x34b   : > { %v550_v58 = vpop.f32.mrf.mxu2 }
 0x34c   : > { %556 = vst.msk [vmem:[%s164_s7 + $0x18] sm:$0xff] %vm233_vm1, %v550_v58 }
 0x34d   : > { %764 = shalt.err (!%p761_p3)
}
 0x34e   : > { %s803_s29 = smov 128   ;;  %s804_s30 = smov 8  }
 0x34f   : > { %672 = dma.vmem_to_hbm [thread:$0]  (%p863_p5), %s571_s11, 512, %s573_s17, %s558_s16, %s803_s29, %s803_s29, %s804_s30  }
 0x350 PF: > { %p678_p4 = scmp.ge.s32.totalorder %s799_s15, 2  ;;  %s587_s4 = sand.u32 1, %s787_s12  }
 0x351   : > { %s588_s5 = scalar_lea.sflag [#allocation3], %s587_s4 }
 0x352   : > { %p675_p7 = pnand %p678_p4, %p867_p6 }
 0x354   : > { %p676_p8 = pneg %p675_p7 }
 0x356   : > { %782 = dma.done.wait (%p676_p8), %s588_s5, 512  }
 0x357   : > { %784 = vsyncadd (%p676_p8), %s588_s5, 4294966784  ;;  %p13_p9 = scmp.ge.s32.totalorder %s850_s18, 4   ;;  %s1007_s12 = smov %s791_s13 }
 0x358   : > { %s1008_s13 = smov %s795_s14  ;;  %s1009_s14 = smov %s861_s21 }
 0x359   : > { %s1010_s15 = smov %s850_s18  ;;  %15 = sbr.rel (!%p13_p9) target bundleno = 3 (0x3), region = 67 }
 0x35e   :  { %594 = vsyncpa [#allocation3], 1 }
 0x35f   :  { %596 = vsyncpa [#allocation3 + $0x1], 1 }

</bundles_post_ra>
